<compile_context>
chip_gen: v5e
topology: v5e:2x2
jax: 0.10.0
libtpu: 0.0.40
codegen_flags: <defaults>
</compile_context>

<pallas_src>
import functools

import jax
import jax.numpy as jnp
from jax import lax
from jax.experimental import pallas as pl
from jax.experimental.pallas import tpu as pltpu


def _round_up(x, m):
    return (x + m - 1) // m * m


def _transition_kernel(state_ref, action_ref,
                       w1s_ref, w1a_ref, b1_ref,
                       w2_ref, b2_ref, w3_ref, b3_ref,
                       o_ref, *, num_actions):
    """One batch tile: fused one-hot + 3-layer MLP (f32 accumulation)."""
    compute_dtype = w1s_ref.dtype
    state = state_ref[...].astype(compute_dtype)          # [TB, S]
    action = action_ref[...]                               # [TB, M] int32
    tb = state.shape[0]
    m_dims = action.shape[1]

    # h1 accumulator in f32: state part on the MXU.
    acc = jnp.dot(state, w1s_ref[...], preferred_element_type=jnp.float32)

    # Fused one-hot (replaces wrapper-side one_hot/concat + HBM round trip).
    # Static loop over action slots (action_multidim); each slot compares the
    # action id against a 2-D iota and contributes a [TB, A] one-hot block.
    oh = []
    for m in range(m_dims):
        a_m = action[:, m:m + 1]                                          # [TB, 1]
        iota = lax.broadcasted_iota(jnp.int32, (tb, num_actions), 1)      # [TB, A]
        oh.append((a_m == iota).astype(compute_dtype))
    onehot = oh[0] if m_dims == 1 else jnp.concatenate(oh, axis=-1)       # [TB, M*A]
    # Mathematically a row-gather of w1_act; expressed as a tiny fused matmul.
    acc = acc + jnp.dot(onehot, w1a_ref[...], preferred_element_type=jnp.float32)

    # Bias + ReLU on the f32 accumulator; downcast only before the next dot.
    h1 = jnp.maximum(acc + b1_ref[...], 0.0).astype(compute_dtype)

    h2 = jnp.dot(h1, w2_ref[...], preferred_element_type=jnp.float32) + b2_ref[...]
    h2 = jnp.maximum(h2, 0.0).astype(compute_dtype)

    out = jnp.dot(h2, w3_ref[...], preferred_element_type=jnp.float32) + b3_ref[...]
    o_ref[...] = out.astype(o_ref.dtype)


def prepare_transition_params(params, state_dim, *, compute_dtype=jnp.bfloat16):
    """Split w1 into state/action parts and cast weights to the compute dtype.

    `params` = (w1, b1, w2, b2, w3, b3) with weights stored [in, out] and
    biases [1, out] (i.e. the transpose of torch's nn.Linear [out, in]).
    Call once, outside the hot path. Biases stay f32 (added on the f32 acc).
    """
    w1, b1, w2, b2, w3, b3 = params
    w1s = w1[:state_dim].astype(compute_dtype)   # [S,   H]
    w1a = w1[state_dim:].astype(compute_dtype)   # [A*M, H]
    return (w1s, w1a, b1.astype(jnp.float32),
            w2.astype(compute_dtype), b2.astype(jnp.float32),
            w3.astype(compute_dtype), b3.astype(jnp.float32))


def transition_forward(state, action, prepared_params, num_actions, *, block_b=128):
    """Full Transition.forward, fully inside one Pallas call."""
    w1s, w1a, b1, w2, b2, w3, b3 = prepared_params
    compute_dtype = w1s.dtype

    B, S = state.shape
    H = w2.shape[0]
    S_out = w3.shape[1]
    AM = w1a.shape[0]
    M = AM // num_actions

    action = action.astype(jnp.int32).reshape(B, M)
    state = state.astype(compute_dtype)

    # Batch tiling: TB rows per grid step (>=8 sublanes, up to block_b).
    tb = min(block_b, _round_up(B, 8))
    b_pad = _round_up(B, tb)
    if b_pad != B:
        state = jnp.pad(state, ((0, b_pad - B), (0, 0)))
        action = jnp.pad(action, ((0, b_pad - B), (0, 0)))
    nb = b_pad // tb

    kernel = functools.partial(_transition_kernel, num_actions=num_actions)

    flops = 2 * b_pad * (S * H + AM * H + H * H + H * S_out)
    bytes_accessed = (
        state.size * state.dtype.itemsize
        + action.size * 4
        + sum(a.size * a.dtype.itemsize for a in (w1s, w1a, b1, w2, b2, w3, b3))
        + b_pad * S_out * 4)

    # Weights/biases: constant index_map -> stay VMEM-resident across tiles.
    resident = lambda shape: pl.BlockSpec(shape, lambda i: (0,) * len(shape))

    out = pl.pallas_call(
        kernel,
        out_shape=jax.ShapeDtypeStruct((b_pad, S_out), jnp.float32),
        grid_spec=pltpu.PrefetchScalarGridSpec(
            num_scalar_prefetch=0,
            grid=(nb,),
            in_specs=[
                pl.BlockSpec((tb, S), lambda i: (i, 0)),   # state tile (streams)
                pl.BlockSpec((tb, M), lambda i: (i, 0)),   # action ids (streams)
                resident(w1s.shape), resident(w1a.shape), resident(b1.shape),
                resident(w2.shape), resident(b2.shape),
                resident(w3.shape), resident(b3.shape),
            ],
            out_specs=pl.BlockSpec((tb, S_out), lambda i: (i, 0)),
        ),
        compiler_params=pltpu.CompilerParams(
            dimension_semantics=("parallel",)),
        cost_estimate=pl.CostEstimate(flops=flops, transcendentals=0,
                                      bytes_accessed=bytes_accessed),
    )(state, action, w1s, w1a, b1, w2, b2, w3, b3)
    return out[:B]


def init_params(key, state_dim, action_dim, hidden_dim, action_multidim=1):
    """Deterministic init mimicking nn.Linear's uniform(-1/sqrt(fan_in), ...)."""
    in_dim = state_dim + action_dim * action_multidim
    dims = [(in_dim, hidden_dim), (hidden_dim, hidden_dim), (hidden_dim, state_dim)]
    params = []
    for fan_in, fan_out in dims:
        key, kw, kb = jax.random.split(key, 3)
        bound = 1.0 / (fan_in ** 0.5)
        w = jax.random.uniform(kw, (fan_in, fan_out), jnp.float32, -bound, bound)
        b = jax.random.uniform(kb, (1, fan_out), jnp.float32, -bound, bound)
        params.extend([w, b])
    return tuple(params)


def _reference_forward(state, action, params, num_actions):
    """Pure-JAX reference matching the PyTorch module (concat formulation)."""
    w1, b1, w2, b2, w3, b3 = params
    one_hot = jax.nn.one_hot(action.astype(jnp.int32), num_actions,
                             dtype=jnp.float32).reshape(state.shape[0], -1)
    x = jnp.concatenate([state.astype(jnp.float32), one_hot], axis=-1)
    h1 = jnp.maximum(x @ w1 + b1, 0.0)
    h2 = jnp.maximum(h1 @ w2 + b2, 0.0)
    return h2 @ w3 + b3


if __name__ == "__main__":
    B = 256            # batch large enough to exercise the batch grid (2 tiles)
    STATE_DIM = 32
    ACTION_DIM = 4
    HIDDEN_DIM = 128
    ACTION_MULTIDIM = 1

    key = jax.random.PRNGKey(0)
    k_state, k_action, k_params = jax.random.split(key, 3)

    state = jax.random.normal(k_state, (B, STATE_DIM), dtype=jnp.float32)
    action = jax.random.randint(k_action, (B,), 0, ACTION_DIM, dtype=jnp.int32)
    params = init_params(k_params, STATE_DIM, ACTION_DIM, HIDDEN_DIM, ACTION_MULTIDIM)

    ref = _reference_forward(state, action, params, ACTION_DIM)

    # f32 compute path: matches the pure-JAX reference tightly.
    prepared_f32 = prepare_transition_params(params, STATE_DIM,
                                             compute_dtype=jnp.float32)
    out_f32 = jax.block_until_ready(
        transition_forward(state, action, prepared_f32, ACTION_DIM))
    assert out_f32.shape == (B, STATE_DIM), out_f32.shape
    assert jnp.allclose(out_f32, ref, atol=1e-4, rtol=1e-4), "f32 mismatch vs reference"

    # bf16 weights/activations with f32 accumulation: the fast path.
    prepared_bf16 = prepare_transition_params(params, STATE_DIM,
                                              compute_dtype=jnp.bfloat16)
    out_bf16 = jax.block_until_ready(
        transition_forward(state, action, prepared_bf16, ACTION_DIM))
    assert out_bf16.shape == (B, STATE_DIM), out_bf16.shape
    assert jnp.allclose(out_bf16, ref, atol=1e-1, rtol=1e-1), "bf16 mismatch vs reference"

    print("KERNEL_OK")
</pallas_src>

<mosaic_0001>
module attributes {stable_mosaic.version = 11 : i64} {
  func.func @_transition_kernel(%arg0: i32, %arg1: memref<128x32xf32, #tpu.memory_space<vmem>>, %arg2: memref<128x1xi32, #tpu.memory_space<vmem>>, %arg3: memref<32x128xf32, #tpu.memory_space<vmem>>, %arg4: memref<4x128xf32, #tpu.memory_space<vmem>>, %arg5: memref<1x128xf32, #tpu.memory_space<vmem>>, %arg6: memref<128x128xf32, #tpu.memory_space<vmem>>, %arg7: memref<1x128xf32, #tpu.memory_space<vmem>>, %arg8: memref<128x32xf32, #tpu.memory_space<vmem>>, %arg9: memref<1x32xf32, #tpu.memory_space<vmem>>, %arg10: memref<128x32xf32, #tpu.memory_space<vmem>>) attributes {dimension_semantics = [#tpu.dimension_semantics<parallel>], iteration_bounds = array<i64: 2>, scalar_prefetch = 0 : i64, scratch_operands = 0 : i64, tpu.core_type = #tpu.core_type<tc>, window_params = [{transform_indices = @transform_0, window_bounds = array<i64: 128, 32>}, {transform_indices = @transform_1, window_bounds = array<i64: 128, 1>}, {pipeline_mode = #tpu.pipeline_mode<synchronous>, transform_indices = @transform_2, window_bounds = array<i64: 32, 128>}, {pipeline_mode = #tpu.pipeline_mode<synchronous>, transform_indices = @transform_3, window_bounds = array<i64: 4, 128>}, {pipeline_mode = #tpu.pipeline_mode<synchronous>, transform_indices = @transform_4, window_bounds = array<i64: 1, 128>}, {pipeline_mode = #tpu.pipeline_mode<synchronous>, transform_indices = @transform_5, window_bounds = array<i64: 128, 128>}, {pipeline_mode = #tpu.pipeline_mode<synchronous>, transform_indices = @transform_6, window_bounds = array<i64: 1, 128>}, {pipeline_mode = #tpu.pipeline_mode<synchronous>, transform_indices = @transform_7, window_bounds = array<i64: 128, 32>}, {pipeline_mode = #tpu.pipeline_mode<synchronous>, transform_indices = @transform_8, window_bounds = array<i64: 1, 32>}, {transform_indices = @transform_9, window_bounds = array<i64: 128, 32>}]} {
    %c0 = arith.constant 0 : index
    %c0_0 = arith.constant 0 : index
    %0 = vector.load %arg1[%c0, %c0_0] : memref<128x32xf32, #tpu.memory_space<vmem>>, vector<128x32xf32>
    %c0_1 = arith.constant 0 : index
    %c0_2 = arith.constant 0 : index
    %1 = vector.load %arg2[%c0_1, %c0_2] : memref<128x1xi32, #tpu.memory_space<vmem>>, vector<128x1xi32>
    %c0_3 = arith.constant 0 : index
    %c0_4 = arith.constant 0 : index
    %2 = vector.load %arg3[%c0_3, %c0_4] : memref<32x128xf32, #tpu.memory_space<vmem>>, vector<32x128xf32>
    %cst = arith.constant dense<0.000000e+00> : vector<128x128xf32>
    %3 = tpu.matmul %0, %2, %cst {dimension_numbers = #tpu.dot_dimension_numbers<[1], [0], [0], [1], [0, 0, 1, 1], [], []>} : vector<128x32xf32>, vector<32x128xf32>, vector<128x128xf32> -> vector<128x128xf32>
    %4 = tpu.iota {dimensions = array<i32: 1>} : vector<128x4xi32>
    %5 = vector.broadcast %1 : vector<128x1xi32> to vector<128x4xi32>
    %6 = arith.cmpi eq, %5, %4 : vector<128x4xi32>
    %7 = arith.extui %6 : vector<128x4xi1> to vector<128x4xi32>
    %8 = arith.sitofp %7 : vector<128x4xi32> to vector<128x4xf32>
    %c0_5 = arith.constant 0 : index
    %c0_6 = arith.constant 0 : index
    %9 = vector.load %arg4[%c0_5, %c0_6] : memref<4x128xf32, #tpu.memory_space<vmem>>, vector<4x128xf32>
    %cst_7 = arith.constant dense<0.000000e+00> : vector<128x128xf32>
    %10 = tpu.matmul %8, %9, %cst_7 {dimension_numbers = #tpu.dot_dimension_numbers<[1], [0], [0], [1], [0, 0, 1, 1], [], []>} : vector<128x4xf32>, vector<4x128xf32>, vector<128x128xf32> -> vector<128x128xf32>
    %11 = arith.addf %3, %10 : vector<128x128xf32>
    %c0_8 = arith.constant 0 : index
    %c0_9 = arith.constant 0 : index
    %12 = vector.load %arg5[%c0_8, %c0_9] : memref<1x128xf32, #tpu.memory_space<vmem>>, vector<1x128xf32>
    %13 = vector.broadcast %12 : vector<1x128xf32> to vector<128x128xf32>
    %14 = arith.addf %11, %13 : vector<128x128xf32>
    %cst_10 = arith.constant 0.000000e+00 : f32
    %15 = vector.broadcast %cst_10 : f32 to vector<128x128xf32>
    %16 = arith.maximumf %14, %15 : vector<128x128xf32>
    %c0_11 = arith.constant 0 : index
    %c0_12 = arith.constant 0 : index
    %17 = vector.load %arg6[%c0_11, %c0_12] : memref<128x128xf32, #tpu.memory_space<vmem>>, vector<128x128xf32>
    %cst_13 = arith.constant dense<0.000000e+00> : vector<128x128xf32>
    %18 = tpu.matmul %16, %17, %cst_13 {dimension_numbers = #tpu.dot_dimension_numbers<[1], [0], [0], [1], [0, 0, 1, 1], [], []>} : vector<128x128xf32>, vector<128x128xf32>, vector<128x128xf32> -> vector<128x128xf32>
    %c0_14 = arith.constant 0 : index
    %c0_15 = arith.constant 0 : index
    %19 = vector.load %arg7[%c0_14, %c0_15] : memref<1x128xf32, #tpu.memory_space<vmem>>, vector<1x128xf32>
    %20 = vector.broadcast %19 : vector<1x128xf32> to vector<128x128xf32>
    %21 = arith.addf %18, %20 : vector<128x128xf32>
    %cst_16 = arith.constant 0.000000e+00 : f32
    %22 = vector.broadcast %cst_16 : f32 to vector<128x128xf32>
    %23 = arith.maximumf %21, %22 : vector<128x128xf32>
    %c0_17 = arith.constant 0 : index
    %c0_18 = arith.constant 0 : index
    %24 = vector.load %arg8[%c0_17, %c0_18] : memref<128x32xf32, #tpu.memory_space<vmem>>, vector<128x32xf32>
    %cst_19 = arith.constant dense<0.000000e+00> : vector<128x32xf32>
    %25 = tpu.matmul %23, %24, %cst_19 {dimension_numbers = #tpu.dot_dimension_numbers<[1], [0], [0], [1], [0, 0, 1, 1], [], []>} : vector<128x128xf32>, vector<128x32xf32>, vector<128x32xf32> -> vector<128x32xf32>
    %c0_20 = arith.constant 0 : index
    %c0_21 = arith.constant 0 : index
    %26 = vector.load %arg9[%c0_20, %c0_21] : memref<1x32xf32, #tpu.memory_space<vmem>>, vector<1x32xf32>
    %27 = vector.broadcast %26 : vector<1x32xf32> to vector<128x32xf32>
    %28 = arith.addf %25, %27 : vector<128x32xf32>
    %c0_22 = arith.constant 0 : index
    %c0_23 = arith.constant 0 : index
    %29 = vector.load %arg10[%c0_22, %c0_23] : memref<128x32xf32, #tpu.memory_space<vmem>>, vector<128x32xf32>
    tpu.vector_store %arg10[%c0_22, %c0_23], %28 {strides = array<i32>} : memref<128x32xf32, #tpu.memory_space<vmem>>, vector<128x32xf32>,
    return
  }
  func.func @transform_0(%arg0: i32) -> (i32, i32) {
    %c0_i32 = arith.constant 0 : i32
    %c0_i32_0 = arith.constant 0 : i32
    return %arg0, %c0_i32 : i32, i32
  }
  func.func @transform_1(%arg0: i32) -> (i32, i32) {
    %c0_i32 = arith.constant 0 : i32
    %c0_i32_0 = arith.constant 0 : i32
    return %arg0, %c0_i32 : i32, i32
  }
  func.func @transform_2(%arg0: i32) -> (i32, i32) {
    %c0_i32 = arith.constant 0 : i32
    %c0_i32_0 = arith.constant 0 : i32
    %c0_i32_1 = arith.constant 0 : i32
    return %c0_i32, %c0_i32_0 : i32, i32
  }
  func.func @transform_3(%arg0: i32) -> (i32, i32) {
    %c0_i32 = arith.constant 0 : i32
    %c0_i32_0 = arith.constant 0 : i32
    %c0_i32_1 = arith.constant 0 : i32
    return %c0_i32, %c0_i32_0 : i32, i32
  }
  func.func @transform_4(%arg0: i32) -> (i32, i32) {
    %c0_i32 = arith.constant 0 : i32
    %c0_i32_0 = arith.constant 0 : i32
    %c0_i32_1 = arith.constant 0 : i32
    return %c0_i32, %c0_i32_0 : i32, i32
  }
  func.func @transform_5(%arg0: i32) -> (i32, i32) {
    %c0_i32 = arith.constant 0 : i32
    %c0_i32_0 = arith.constant 0 : i32
    %c0_i32_1 = arith.constant 0 : i32
    return %c0_i32, %c0_i32_0 : i32, i32
  }
  func.func @transform_6(%arg0: i32) -> (i32, i32) {
    %c0_i32 = arith.constant 0 : i32
    %c0_i32_0 = arith.constant 0 : i32
    %c0_i32_1 = arith.constant 0 : i32
    return %c0_i32, %c0_i32_0 : i32, i32
  }
  func.func @transform_7(%arg0: i32) -> (i32, i32) {
    %c0_i32 = arith.constant 0 : i32
    %c0_i32_0 = arith.constant 0 : i32
    %c0_i32_1 = arith.constant 0 : i32
    return %c0_i32, %c0_i32_0 : i32, i32
  }
  func.func @transform_8(%arg0: i32) -> (i32, i32) {
    %c0_i32 = arith.constant 0 : i32
    %c0_i32_0 = arith.constant 0 : i32
    %c0_i32_1 = arith.constant 0 : i32
    return %c0_i32, %c0_i32_0 : i32, i32
  }
  func.func @transform_9(%arg0: i32) -> (i32, i32) {
    %c0_i32 = arith.constant 0 : i32
    %c0_i32_0 = arith.constant 0 : i32
    return %arg0, %c0_i32 : i32, i32
  }
}

</mosaic_0001>

<bundles_post_ra>
// kernel: tpu_custom_call.1
= control target key start
LH: loop header
LB: loop body
LE: loop exit
PB: predicated region body
PF: predicated region fallthrough
CT: control target
= control target key end

     0   :  { %s1201_s30 = smov 0   ;;  %s1521_s0 = inlined_call_operand.vmem [shape: f32[256,32], index: 0, kind: input, shape index: {}]   ;;  %s1522_s1 = inlined_call_operand.vmem [shape: s32[256,1], index: 1, kind: input, shape index: {}]   ;;  %s1523_s2 = inlined_call_operand.vmem [shape: f32[32,128], index: 2, kind: input, shape index: {}]   ;;  %s1524_s3 = inlined_call_operand.vmem [shape: f32[4,128], index: 3, kind: input, shape index: {}]   ;;  %s1525_s4 = inlined_call_operand.vmem [shape: f32[1,128], index: 4, kind: input, shape index: {}]   ;;  %s1526_s5 = inlined_call_operand.vmem [shape: f32[128,128], index: 5, kind: input, shape index: {}]   ;;  %s1527_s6 = inlined_call_operand.vmem [shape: f32[1,128], index: 6, kind: input, shape index: {}]   ;;  %s1528_s7 = inlined_call_operand.vmem [shape: f32[128,32], index: 7, kind: input, shape index: {}]   ;;  %s1529_s8 = inlined_call_operand.vmem [shape: f32[1,32], index: 8, kind: input, shape index: {}]   ;;  %s1530_s9 = inlined_call_operand.vmem [shape: f32[256,32], index: 9, kind: output, shape index: {}]  }
   0x1 LB: > { %s1031_s10 = sadd.s32 4294967295, %s1147_s30   ;;  %p1035_p0 = scmp.ge.s32.totalorder %s1147_s30, 1  ;;  %s1147_s30 = sphi %s1201_s30, %s19_s30  }
   0x2   : > { %p299_p1 = scmp.lt.s32.totalorder %s1147_s30, 3 }
   0x4   : > { %p300_p2 = pnand %p1035_p0, %p299_p1 }
   0x5   : > { %s1036_s11 = sshll.u32 (!%p300_p2), %s1031_s10, 4 }
   0x6   : > { %303 = sbr.rel (%p300_p2) target bundleno = 655 (0x28f), region = 56  ;;  %p341_p3 = scmp.lt.s32.totalorder (!%p300_p2), %s1036_s11, 31 }
   0xb   : > { %v1149_v0 = vmov 0   ;;  %s1532_s11 = smov (!%p341_p3, %s1036_s11), 31  ;;  %v393_v7 = vld [vmem:[%s1523_s2 + $0x18] sm:$0xff]  ;;  %v392_v8 = vld [vmem:[%s1523_s2 + $0x10] sm:$0xff]  ;;  %v391_v9 = vld [vmem:[%s1523_s2 + $0x8] sm:$0xff]  ;;  %vm542_vm0 = vcmask 1043456   ;;  %v394_v27 = vlaneseq }
   0xc   : > { %1136 = vset.pattern.permute.xlu1 %v1149_v0  ;;  %1135 = vset.pattern.permute.xlu0 %v1149_v0  ;;  %s1209_s12 = sshll.u32 %s1532_s11, 3  ;;  %v492_v20 = vld [vmem:[%s1524_s3] sm:$0xf]  ;;  %vm611_vm1 = vcmask 261120   ;;  %v1150_v31 = vmov 0.0   ;;  %vm493_vm3 = vcmask 31744  }
   0xd   : > { %1137 = vset.pattern.permute.xlu2 %v1149_v0  ;;  %s1215_s15 = scalar_lea.vmem %s1522_s1, %s1209_s12  ;;  %672 = vmatpush.msra.mxu1 %v393_v7  ;;  %s1246_s24 = scalar_lea.vmem %s1521_s0, %s1209_s12  ;;  %v390_v21 = vld [vmem:[%s1523_s2] sm:$0xff]  ;;  %v1262_v28 = vand.u32 127, %v394_v27  ;;  %v775_v7 = vld [vmem:[%s1526_s5 + $0x70] sm:$0xff] }
   0xe   : > { %v376_v1 = vld [vmem:[%s1215_s15 + $0x10] sm:$0xff]  ;;  %v374_v2 = vld [vmem:[%s1215_s15] sm:$0xff]  ;;  %v377_v4 = vld [vmem:[%s1215_s15 + $0x18] sm:$0xff]  ;;  %1058 = vmatpush.msk.msra.mxu0 %vm542_vm0, %v492_v20  ;;  %s1484_s26 = scalar_lea.vmem %s1530_s9, %s1209_s12 }
   0xf   : > { %403 = vperm.xlu1 %1136, %v376_v1   ;;  %397 = vperm.xlu0 %1135, %v374_v2   ;;  %v378_v3 = vld [vmem:[%s1215_s15 + $0x20] sm:$0xff]  ;;  %v375_v5 = vld [vmem:[%s1215_s15 + $0x8] sm:$0xff]  ;;  %v381_v10 = vld [vmem:[%s1215_s15 + $0x38] sm:$0xff] }
  0x10   : > { %409 = vperm.xlu2 %1137, %v378_v3   ;;  %v379_v6 = vld [vmem:[%s1215_s15 + $0x28] sm:$0xff]  ;;  %673 = vmatpush.msra.mxu1 %v392_v8  ;;  %v380_v11 = vld [vmem:[%s1215_s15 + $0x30] sm:$0xff]  ;;  %v382_v12 = vld [vmem:[%s1215_s15 + $0x40] sm:$0xff] }
  0x11   : > { %v384_v13 = vld [vmem:[%s1215_s15 + $0x50] sm:$0xff]  ;;  %v383_v14 = vld [vmem:[%s1215_s15 + $0x48] sm:$0xff]  ;;  %v385_v15 = vld [vmem:[%s1215_s15 + $0x58] sm:$0xff] }
  0x12   : > { %674 = vmatpush.msra.mxu1 %v391_v9  ;;  %v387_v16 = vld [vmem:[%s1215_s15 + $0x68] sm:$0xff]  ;;  %v386_v17 = vld [vmem:[%s1215_s15 + $0x60] sm:$0xff]  ;;  %v388_v18 = vld [vmem:[%s1215_s15 + $0x70] sm:$0xff] }
  0x13   : > { %v389_v19 = vld [vmem:[%s1215_s15 + $0x78] sm:$0xff]  ;;  %v358_v22 = vld [vmem:[%s1246_s24] sm:$0xff]  ;;  %v359_v24 = vld [vmem:[%s1246_s24 + $0x8] sm:$0xff] }
  0x14   : > { %675 = vmatpush.msra.mxu1 %v390_v21  ;;  %v360_v26 = vld [vmem:[%s1246_s24 + $0x10] sm:$0xff]  ;;  %v361_v30 = vld [vmem:[%s1246_s24 + $0x18] sm:$0xff]  ;;  %v362_v37 = vld [vmem:[%s1246_s24 + $0x20] sm:$0xff] }
  0x15   : > { %1075 = vmatmul.msk.f32.vlgmr.msra.gmra.mxu1 %vm611_vm1, %v358_v22  ;;  %v363_v43 = vld [vmem:[%s1246_s24 + $0x28] sm:$0xff]  ;;  %v364_v48 = vld [vmem:[%s1246_s24 + $0x30] sm:$0xff]  ;;  %v365_v54 = vld [vmem:[%s1246_s24 + $0x38] sm:$0xff] }
  0x16   : > { %v366_v60 = vld [vmem:[%s1246_s24 + $0x40] sm:$0xff]  ;;  %v367_v0 = vld [vmem:[%s1246_s24 + $0x48] sm:$0xff]  ;;  %v368_v2 = vld [vmem:[%s1246_s24 + $0x50] sm:$0xff] }
  0x17   : > { %406 = vperm.xlu1 %1136, %v377_v4   ;;  %400 = vperm.xlu0 %1135, %v375_v5   ;;  %v369_v4 = vld [vmem:[%s1246_s24 + $0x58] sm:$0xff]  ;;  %v370_v5 = vld [vmem:[%s1246_s24 + $0x60] sm:$0xff]  ;;  %v371_v8 = vld [vmem:[%s1246_s24 + $0x68] sm:$0xff] }
  0x18   : > { %412 = vperm.xlu2 %1137, %v379_v6   ;;  %v776_v6 = vld [vmem:[%s1526_s5 + $0x78] sm:$0xff]  ;;  %v774_v9 = vld [vmem:[%s1526_s5 + $0x68] sm:$0xff]  ;;  %v765_v20 = vld [vmem:[%s1526_s5 + $0x20] sm:$0xff] }
  0x19   : > { %781 = vmatpush.msrb.mxu0 %v776_v6  ;;  %1093 = vmatpush.msra.mxu2 %v776_v6  ;;  %v764_v21 = vld [vmem:[%s1526_s5 + $0x18] sm:$0xff] }
  0x1b   : > { %782 = vmatpush.msrb.mxu0 %v775_v7  ;;  %1094 = vmatpush.msra.mxu2 %v775_v7 }
  0x1d   : > { %1076 = vmatmul.msk.f32.gmra.mxu1 %vm611_vm1, %v359_v24  ;;  %783 = vmatpush.msrb.mxu0 %v774_v9  ;;  %v762_v24 = vld [vmem:[%s1526_s5 + $0x8] sm:$0xff] }
  0x1e   : > { %1095 = vmatpush.msra.mxu2 %v774_v9 }
  0x1f   : > { %418 = vperm.xlu1 %1136, %v381_v10   ;;  %415 = vperm.xlu0 %1135, %v380_v11   ;;  %v773_v10 = vld [vmem:[%s1526_s5 + $0x60] sm:$0xff]  ;;  %v772_v11 = vld [vmem:[%s1526_s5 + $0x58] sm:$0xff] }
  0x20   : > { %421 = vperm.xlu2 %1137, %v382_v12   ;;  %784 = vmatpush.msrb.mxu0 %v773_v10  ;;  %v771_v12 = vld [vmem:[%s1526_s5 + $0x50] sm:$0xff] }
  0x21   : > { %1096 = vmatpush.msra.mxu2 %v773_v10 }
  0x22   : > { %785 = vmatpush.msrb.mxu0 %v772_v11 }
  0x23   : > { %1097 = vmatpush.msra.mxu2 %v772_v11  ;;  %v877_v11 = vld [vmem:[%s1528_s7 + $0x78] sm:$0xff] }
  0x24   : > { %786 = vmatpush.msrb.mxu0 %v771_v12  ;;  %882 = vmatpush.msrb.mxu1 %v877_v11 }
  0x25   : > { %1077 = vmatmul.msk.f32.gmra.mxu1 %vm611_vm1, %v360_v26  ;;  %1098 = vmatpush.msra.mxu2 %v771_v12  ;;  %v876_v12 = vld [vmem:[%s1528_s7 + $0x70] sm:$0xff] }
  0x26   : > { %1109 = vmatpush.msra.mxu3 %v877_v11  ;;  %883 = vmatpush.msrb.mxu1 %v876_v12 }
  0x27   : > { %427 = vperm.xlu1 %1136, %v384_v13   ;;  %424 = vperm.xlu0 %1135, %v383_v14   ;;  %v372_v13 = vld [vmem:[%s1246_s24 + $0x70] sm:$0xff]  ;;  %v770_v14 = vld [vmem:[%s1526_s5 + $0x48] sm:$0xff] }
  0x28   : > { %430 = vperm.xlu2 %1137, %v385_v15   ;;  %v769_v15 = vld [vmem:[%s1526_s5 + $0x40] sm:$0xff]  ;;  %787 = vmatpush.msrb.mxu0 %v770_v14 }
  0x29   : > { %1099 = vmatpush.msra.mxu2 %v770_v14  ;;  %v875_v14 = vld [vmem:[%s1528_s7 + $0x68] sm:$0xff]  ;;  %1110 = vmatpush.msra.mxu3 %v876_v12 }
  0x2a   : > { %788 = vmatpush.msrb.mxu0 %v769_v15  ;;  %884 = vmatpush.msrb.mxu1 %v875_v14 }
  0x2b   : > { %1100 = vmatpush.msra.mxu2 %v769_v15  ;;  %1111 = vmatpush.msra.mxu3 %v875_v14 }
  0x2d   : > { %1078 = vmatmul.msk.f32.gmra.mxu1 %vm611_vm1, %v361_v30 }
  0x2f   : > { %436 = vperm.xlu1 %1136, %v387_v16   ;;  %433 = vperm.xlu0 %1135, %v386_v17   ;;  %v768_v16 = vld [vmem:[%s1526_s5 + $0x38] sm:$0xff]  ;;  %v767_v17 = vld [vmem:[%s1526_s5 + $0x30] sm:$0xff] }
  0x30   : > { %439 = vperm.xlu2 %1137, %v388_v18   ;;  %789 = vmatpush.msrb.mxu0 %v768_v16  ;;  %v373_v18 = vld [vmem:[%s1246_s24 + $0x78] sm:$0xff] }
  0x31   : > { %1101 = vmatpush.msra.mxu2 %v768_v16 }
  0x32   : > { %790 = vmatpush.msrb.mxu0 %v767_v17 }
  0x33   : > { %1102 = vmatpush.msra.mxu2 %v767_v17  ;;  %v874_v17 = vld [vmem:[%s1528_s7 + $0x60] sm:$0xff] }
  0x34   : > { %885 = vmatpush.msrb.mxu1 %v874_v17  ;;  %1112 = vmatpush.msra.mxu3 %v874_v17 }
  0x35   : > { %1079 = vmatmul.msk.f32.gmra.mxu1 %vm611_vm1, %v362_v37 }
  0x37   : > { %442 = vperm.xlu0 %1135, %v389_v19   ;;  %v766_v19 = vld [vmem:[%s1526_s5 + $0x28] sm:$0xff] }
  0x38   : > { %791 = vmatpush.msrb.mxu0 %v766_v19  ;;  %1103 = vmatpush.msra.mxu2 %v766_v19 }
  0x3a   : > { %792 = vmatpush.msrb.mxu0 %v765_v20  ;;  %1104 = vmatpush.msra.mxu2 %v765_v20  ;;  %v873_v20 = vld [vmem:[%s1528_s7 + $0x58] sm:$0xff] }
  0x3b   : > { %886 = vmatpush.msrb.mxu1 %v873_v20  ;;  %1113 = vmatpush.msra.mxu3 %v873_v20 }
  0x3c   : > { %793 = vmatpush.msrb.mxu0 %v764_v21  ;;  %1105 = vmatpush.msra.mxu2 %v764_v21  ;;  %v872_v21 = vld [vmem:[%s1528_s7 + $0x50] sm:$0xff] }
  0x3d   : > { %1080 = vmatmul.msk.f32.gmra.mxu1 %vm611_vm1, %v363_v43  ;;  %1114 = vmatpush.msra.mxu3 %v872_v21 }
  0x3e   : > { %887 = vmatpush.msrb.mxu1 %v872_v21 }
  0x45   : > { %1081 = vmatmul.msk.f32.gmra.mxu1 %vm611_vm1, %v364_v48 }
  0x4d   : > { %1082 = vmatmul.msk.f32.gmra.mxu1 %vm611_vm1, %v365_v54 }
  0x55   : > { %1083 = vmatmul.msk.f32.gmra.mxu1 %vm611_vm1, %v366_v60 }
  0x5d   : > { %1084 = vmatmul.msk.f32.gmra.mxu1 %vm611_vm1, %v367_v0 }
  0x65   : > { %1085 = vmatmul.msk.f32.gmra.mxu1 %vm611_vm1, %v368_v2 }
  0x6a   : > { %v410_v23 = vpop.permute.xlu2 %409 }
  0x6b   : > { %vm448_vm12 = vcmp.eq.s32.totalorder %v410_v23, %v1262_v28  ;;  %v763_v23 = vld [vmem:[%s1526_s5 + $0x10] sm:$0xff] }
  0x6c   : > { %v1046_v55 = vsel %vm448_vm12, 1.0, %v1150_v31  ;;  %794 = vmatpush.msrb.mxu0 %v763_v23  ;;  %1106 = vmatpush.msra.mxu2 %v763_v23  ;;  %v871_v23 = vld [vmem:[%s1528_s7 + $0x48] sm:$0xff] }
  0x6d   : > { %1086 = vmatmul.msk.f32.gmra.mxu1 %vm611_vm1, %v369_v4  ;;  %1115 = vmatpush.msra.mxu3 %v871_v23 }
  0x6e   : > { %795 = vmatpush.msrb.mxu0 %v762_v24  ;;  %1107 = vmatpush.msra.mxu2 %v762_v24 }
  0x6f   : > { %888 = vmatpush.msrb.mxu1 %v871_v23 }
  0x72   : > { %v1258_v25 = vpop.permute.xlu2 %412 }
  0x73   : > { %vm449_vm15 = vcmp.eq.s32.totalorder %v1258_v25, %v1262_v28  ;;  %v761_v25 = vld [vmem:[%s1526_s5] sm:$0xff] }
  0x74   : > { %v1047_v62 = vsel %vm449_vm15, 1.0, %v1150_v31  ;;  %796 = vmatpush.msrb.mxu0 %v761_v25  ;;  %1108 = vmatpush.msra.mxu2 %v761_v25  ;;  %v870_v25 = vld [vmem:[%s1528_s7 + $0x40] sm:$0xff] }
  0x75   : > { %1087 = vmatmul.msk.f32.gmra.mxu1 %vm611_vm1, %v370_v5  ;;  %1116 = vmatpush.msra.mxu3 %v870_v25 }
  0x76   : > { %889 = vmatpush.msrb.mxu1 %v870_v25 }
  0x7a   : > { %v422_v29 = vpop.permute.xlu2 %421 }
  0x7b   : > { %vm452_vm2 = vcmp.eq.s32.totalorder %v422_v29, %v1262_v28  ;;  %v1408_v29 = vld [vmem:[%s1525_s4] ss:$0 sm:$0xff] }
  0x7c   : > { %v1268_v32 = vsel %vm452_vm2, 1.0, %v1150_v31 }
  0x7d   : > { %1088 = vmatmul.msk.f32.gmra.mxu1 %vm611_vm1, %v371_v8 }
  0x81   : > { %v404_v33 = vpop.permute.xlu1 %403  ;;  %v398_v34 = vpop.permute.xlu0 %397 }
  0x82   : > { %vm444_vm4 = vcmp.eq.s32.totalorder %v398_v34, %v1262_v28  ;;  %v431_v36 = vpop.permute.xlu2 %430  ;;  %vm446_vm8 = vcmp.eq.s32.totalorder %v404_v33, %v1262_v28 }
  0x83   : > { %v1042_v35 = vsel %vm444_vm4, 1.0, %v1150_v31  ;;  %vm455_vm5 = vcmp.eq.s32.totalorder %v431_v36, %v1262_v28  ;;  %v1044_v45 = vsel %vm446_vm8, 1.0, %v1150_v31 }
  0x84   : > { %1059 = vmatmul.msk.f32.vlgmr.msra.gmra.mxu0 %vm493_vm3, %v1042_v35  ;;  %v1277_v38 = vsel %vm455_vm5, 1.0, %v1150_v31 }
  0x85   : > { %1089 = vmatmul.msk.f32.gmra.mxu1 %vm611_vm1, %v372_v13 }
  0x89   : > { %v407_v39 = vpop.permute.xlu1 %406  ;;  %v401_v40 = vpop.permute.xlu0 %400 }
  0x8a   : > { %vm445_vm6 = vcmp.eq.s32.totalorder %v401_v40, %v1262_v28  ;;  %v440_v42 = vpop.permute.xlu2 %439  ;;  %vm447_vm9 = vcmp.eq.s32.totalorder %v407_v39, %v1262_v28 }
  0x8b   : > { %v1043_v41 = vsel %vm445_vm6, 1.0, %v1150_v31  ;;  %vm458_vm7 = vcmp.eq.s32.totalorder %v440_v42, %v1262_v28  ;;  %v1045_v51 = vsel %vm447_vm9, 1.0, %v1150_v31 }
  0x8c   : > { %1060 = vmatmul.msk.f32.gmra.mxu0 %vm493_vm3, %v1043_v41  ;;  %v1286_v44 = vsel %vm458_vm7, 1.0, %v1150_v31 }
  0x8d   : > { %1090 = vmatmul.msk.f32.gmra.mxu1 %vm611_vm1, %v373_v18 }
  0x91   : > { %v419_v46 = vpop.permute.xlu1 %418  ;;  %v416_v47 = vpop.permute.xlu0 %415 }
  0x92   : > { %vm450_vm2 = vcmp.eq.s32.totalorder %v416_v47, %v1262_v28  ;;  %vm451_vm4 = vcmp.eq.s32.totalorder %v419_v46, %v1262_v28  ;;  %v677_v22 = vpop.f32.mrf.mxu1 }
  0x93   : > { %v1048_v1 = vsel %vm450_vm2, 1.0, %v1150_v31  ;;  %v1049_v3 = vsel %vm451_vm4, 1.0, %v1150_v31 }
  0x94   : > { %1061 = vmatmul.msk.f32.gmra.mxu0 %vm493_vm3, %v1044_v45 }
  0x99   : > { %v428_v49 = vpop.permute.xlu1 %427  ;;  %v425_v50 = vpop.permute.xlu0 %424 }
  0x9a   : > { %vm454_vm10 = vcmp.eq.s32.totalorder %v428_v49, %v1262_v28  ;;  %vm453_vm11 = vcmp.eq.s32.totalorder %v425_v50, %v1262_v28  ;;  %v680_v26 = vpop.f32.mrf.mxu1 }
  0x9b   : > { %v1052_v52 = vsel %vm454_vm10, 1.0, %v1150_v31  ;;  %v1051_v53 = vsel %vm453_vm11, 1.0, %v1150_v31 }
  0x9c   : > { %1062 = vmatmul.msk.f32.gmra.mxu0 %vm493_vm3, %v1045_v51 }
  0xa1   : > { %v437_v56 = vpop.permute.xlu1 %436  ;;  %v434_v57 = vpop.permute.xlu0 %433 }
  0xa2   : > { %vm457_vm13 = vcmp.eq.s32.totalorder %v437_v56, %v1262_v28  ;;  %vm456_vm14 = vcmp.eq.s32.totalorder %v434_v57, %v1262_v28  ;;  %v683_v27 = vpop.f32.mrf.mxu1 }
  0xa3   : > { %v1307_v58 = vsel %vm457_vm13, 1.0, %v1150_v31  ;;  %v1310_v59 = vsel %vm456_vm14, 1.0, %v1150_v31 }
  0xa4   : > { %1063 = vmatmul.msk.f32.gmra.mxu0 %vm493_vm3, %v1046_v55 }
  0xa9   : > { %v443_v61 = vpop.permute.xlu0 %442 }
  0xaa   : > { %vm459_vm0 = vcmp.eq.s32.totalorder %v443_v61, %v1262_v28  ;;  %v686_v28 = vpop.f32.mrf.mxu1 }
  0xab   : > { %v1320_v63 = vsel %vm459_vm0, 1.0, %v1150_v31 }
  0xac   : > { %1064 = vmatmul.msk.f32.gmra.mxu0 %vm493_vm3, %v1047_v62 }
  0xb2   : > { %v689_v35 = vpop.f32.mrf.mxu1 }
  0xb4   : > { %1065 = vmatmul.msk.f32.gmra.mxu0 %vm493_vm3, %v1048_v1 }
  0xba   : > { %v692_v41 = vpop.f32.mrf.mxu1 }
  0xbc   : > { %1066 = vmatmul.msk.f32.gmra.mxu0 %vm493_vm3, %v1049_v3 }
  0xc2   : > { %v695_v47 = vpop.f32.mrf.mxu1 }
  0xc4   : > { %1067 = vmatmul.msk.f32.gmra.mxu0 %vm493_vm3, %v1268_v32 }
  0xcc   : > { %1068 = vmatmul.msk.f32.gmra.mxu0 %vm493_vm3, %v1051_v53  ;;  %v698_v53 = vpop.f32.mrf.mxu1 }
  0xd4   : > { %1069 = vmatmul.msk.f32.gmra.mxu0 %vm493_vm3, %v1052_v52 }
  0xdc   : > { %1070 = vmatmul.msk.f32.gmra.mxu0 %vm493_vm3, %v1277_v38 }
  0xe4   : > { %1071 = vmatmul.msk.f32.gmra.mxu0 %vm493_vm3, %v1310_v59  ;;  %v701_v59 = vpop.f32.mrf.mxu1 }
  0xec   : > { %1072 = vmatmul.msk.f32.gmra.mxu0 %vm493_vm3, %v1307_v58  ;;  %v704_v1 = vpop.f32.mrf.mxu1 }
  0xf4   : > { %1073 = vmatmul.msk.f32.gmra.mxu0 %vm493_vm3, %v1286_v44  ;;  %v707_v7 = vpop.f32.mrf.mxu1 }
  0xfc   : > { %1074 = vmatmul.msk.f32.gmra.mxu0 %vm493_vm3, %v1320_v63  ;;  %v710_v16 = vpop.f32.mrf.mxu1 }
 0x101   : > { %v563_v30 = vpop.f32.mrf.mxu0 }
 0x102   : > { %v678_v31 = vadd.f32 %v677_v22, %v563_v30  ;;  %v869_v30 = vld [vmem:[%s1528_s7 + $0x38] sm:$0xff] }
 0x103   : > { %890 = vmatpush.msrb.mxu1 %v869_v30  ;;  %1117 = vmatpush.msra.mxu3 %v869_v30 }
 0x104   : > { %v729_v32 = vadd.f32 %v1408_v29, %v678_v31  ;;  %v868_v31 = vld [vmem:[%s1528_s7 + $0x30] sm:$0xff] }
 0x105   : > { %891 = vmatpush.msrb.mxu1 %v868_v31  ;;  %1118 = vmatpush.msra.mxu3 %v868_v31 }
 0x106   : > { %v745_v33 = vmax.f32 %v729_v32, 0.0 }
 0x108   : > { %797 = vmatmul.f32.vlgmr.msrb.gmra.mxu0 %v745_v33  ;;  %v867_v33 = vld [vmem:[%s1528_s7 + $0x28] sm:$0xff] }
 0x109   : > { %v566_v34 = vpop.f32.mrf.mxu0  ;;  %892 = vmatpush.msrb.mxu1 %v867_v33  ;;  %1119 = vmatpush.msra.mxu3 %v867_v33 }
 0x10a   : > { %v681_v36 = vadd.f32 %v680_v26, %v566_v34 }
 0x10c   : > { %v730_v37 = vadd.f32 %v1408_v29, %v681_v36  ;;  %v865_v36 = vld [vmem:[%s1528_s7 + $0x18] sm:$0xff] }
 0x10e   : > { %v746_v38 = vmax.f32 %v730_v37, 0.0 }
 0x110   : > { %800 = vmatmul.f32.vlgmr.msra.gmra.mxu2 %v746_v38 }
 0x111   : > { %v569_v39 = vpop.f32.mrf.mxu0 }
 0x112   : > { %v684_v40 = vadd.f32 %v683_v27, %v569_v39  ;;  %v713_v27 = vpop.f32.mrf.mxu1 }
 0x114   : > { %v731_v42 = vadd.f32 %v1408_v29, %v684_v40 }
 0x116   : > { %v747_v43 = vmax.f32 %v731_v42, 0.0 }
 0x118   : > { %803 = vmatmul.f32.gmra.mxu2 %v747_v43  ;;  %v863_v43 = vld [vmem:[%s1528_s7 + $0x8] sm:$0xff] }
 0x119   : > { %v572_v44 = vpop.f32.mrf.mxu0 }
 0x11a   : > { %v687_v45 = vadd.f32 %v686_v28, %v572_v44  ;;  %v716_v39 = vpop.f32.mrf.mxu1  ;;  %v862_v44 = vld [vmem:[%s1528_s7] sm:$0xff] }
 0x11c   : > { %v732_v46 = vadd.f32 %v1408_v29, %v687_v45 }
 0x11e   : > { %v748_v48 = vmax.f32 %v732_v46, 0.0 }
 0x120   : > { %806 = vmatmul.f32.gmra.mxu2 %v748_v48 }
 0x121   : > { %v575_v49 = vpop.f32.mrf.mxu0 }
 0x122   : > { %v690_v50 = vadd.f32 %v689_v35, %v575_v49  ;;  %v866_v35 = vld [vmem:[%s1528_s7 + $0x20] sm:$0xff]  ;;  %v719_v48 = vpop.f32.mrf.mxu1 }
 0x123   : > { %893 = vmatpush.msrb.mxu1 %v866_v35  ;;  %1120 = vmatpush.msra.mxu3 %v866_v35 }
 0x124   : > { %v733_v51 = vadd.f32 %v1408_v29, %v690_v50 }
 0x125   : > { %894 = vmatpush.msrb.mxu1 %v865_v36  ;;  %1121 = vmatpush.msra.mxu3 %v865_v36 }
 0x126   : > { %v749_v52 = vmax.f32 %v733_v51, 0.0 }
 0x128   : > { %809 = vmatmul.f32.gmra.mxu2 %v749_v52 }
 0x129   : > { %v578_v54 = vpop.f32.mrf.mxu0 }
 0x12a   : > { %v693_v55 = vadd.f32 %v692_v41, %v578_v54  ;;  %v864_v41 = vld [vmem:[%s1528_s7 + $0x10] sm:$0xff]  ;;  %v722_v54 = vpop.f32.mrf.mxu1 }
 0x12b   : > { %895 = vmatpush.msrb.mxu1 %v864_v41  ;;  %1122 = vmatpush.msra.mxu3 %v864_v41 }
 0x12c   : > { %v734_v56 = vadd.f32 %v1408_v29, %v693_v55 }
 0x12d   : > { %896 = vmatpush.msrb.mxu1 %v863_v43  ;;  %1123 = vmatpush.msra.mxu3 %v863_v43  ;;  %v1140_v43 = vld [vmem:[%s1529_s8] ss:$0 sm:$0xff] }
 0x12e   : > { %v750_v57 = vmax.f32 %v734_v56, 0.0 }
 0x12f   : > { %897 = vmatpush.msrb.mxu1 %v862_v44  ;;  %1124 = vmatpush.msra.mxu3 %v862_v44 }
 0x130   : > { %812 = vmatmul.f32.gmra.mxu2 %v750_v57 }
 0x131   : > { %v581_v58 = vpop.f32.mrf.mxu0 }
 0x132   : > { %v696_v60 = vadd.f32 %v695_v47, %v581_v58 }
 0x134   : > { %v735_v61 = vadd.f32 %v1408_v29, %v696_v60 }
 0x136   : > { %v751_v62 = vmax.f32 %v735_v61, 0.0 }
 0x138   : > { %815 = vmatmul.f32.gmra.mxu2 %v751_v62 }
 0x139   : > { %v584_v63 = vpop.f32.mrf.mxu0 }
 0x13a   : > { %v699_v0 = vadd.f32 %v698_v53, %v584_v63 }
 0x13c   : > { %v736_v2 = vadd.f32 %v1408_v29, %v699_v0 }
 0x13e   : > { %v752_v3 = vmax.f32 %v736_v2, 0.0 }
 0x140   : > { %818 = vmatmul.f32.gmra.mxu2 %v752_v3 }
 0x141   : > { %v587_v4 = vpop.f32.mrf.mxu0 }
 0x142   : > { %v702_v5 = vadd.f32 %v701_v59, %v587_v4  ;;  %v1139_v59 = vld [vmem:[%s1527_s6] ss:$0 sm:$0xff] }
 0x144   : > { %v737_v6 = vadd.f32 %v1408_v29, %v702_v5 }
 0x146   : > { %v753_v8 = vmax.f32 %v737_v6, 0.0 }
 0x148   : > { %821 = vmatmul.f32.gmra.mxu2 %v753_v8 }
 0x149   : > { %v590_v9 = vpop.f32.mrf.mxu0 }
 0x14a   : > { %v705_v10 = vadd.f32 %v704_v1, %v590_v9 }
 0x14c   : > { %v738_v13 = vadd.f32 %v1408_v29, %v705_v10 }
 0x14e   : > { %v754_v15 = vmax.f32 %v738_v13, 0.0 }
 0x150   : > { %824 = vmatmul.f32.gmra.mxu2 %v754_v15 }
 0x151   : > { %v593_v18 = vpop.f32.mrf.mxu0 }
 0x152   : > { %v708_v19 = vadd.f32 %v707_v7, %v593_v18 }
 0x154   : > { %v739_v22 = vadd.f32 %v1408_v29, %v708_v19 }
 0x156   : > { %v755_v24 = vmax.f32 %v739_v22, 0.0 }
 0x158   : > { %827 = vmatmul.f32.gmra.mxu2 %v755_v24 }
 0x159   : > { %v596_v26 = vpop.f32.mrf.mxu0 }
 0x15a   : > { %v711_v28 = vadd.f32 %v710_v16, %v596_v26 }
 0x15c   : > { %v740_v32 = vadd.f32 %v1408_v29, %v711_v28 }
 0x15e   : > { %v756_v34 = vmax.f32 %v740_v32, 0.0 }
 0x160   : > { %830 = vmatmul.f32.gmra.mxu2 %v756_v34 }
 0x161   : > { %v599_v37 = vpop.f32.mrf.mxu0 }
 0x162   : > { %v714_v38 = vadd.f32 %v713_v27, %v599_v37 }
 0x164   : > { %v741_v40 = vadd.f32 %v1408_v29, %v714_v38 }
 0x166   : > { %v757_v42 = vmax.f32 %v741_v40, 0.0 }
 0x168   : > { %833 = vmatmul.f32.gmra.mxu2 %v757_v42 }
 0x169   : > { %v602_v45 = vpop.f32.mrf.mxu0 }
 0x16a   : > { %v717_v46 = vadd.f32 %v716_v39, %v602_v45 }
 0x16c   : > { %v742_v47 = vadd.f32 %v1408_v29, %v717_v46 }
 0x16e   : > { %v758_v49 = vmax.f32 %v742_v47, 0.0 }
 0x170   : > { %836 = vmatmul.f32.gmra.mxu2 %v758_v49 }
 0x171   : > { %v605_v50 = vpop.f32.mrf.mxu0 }
 0x172   : > { %v720_v51 = vadd.f32 %v719_v48, %v605_v50 }
 0x174   : > { %v743_v52 = vadd.f32 %v1408_v29, %v720_v51 }
 0x176   : > { %v759_v53 = vmax.f32 %v743_v52, 0.0 }
 0x178   : > { %839 = vmatmul.f32.gmra.mxu2 %v759_v53 }
 0x179   : > { %v608_v55 = vpop.f32.mrf.mxu0 }
 0x17a   : > { %v723_v56 = vadd.f32 %v722_v54, %v608_v55 }
 0x17c   : > { %v744_v57 = vadd.f32 %v1408_v29, %v723_v56 }
 0x17e   : > { %v760_v58 = vmax.f32 %v744_v57, 0.0 }
 0x180   : > { %842 = vmatmul.f32.gmra.mxu2 %v760_v58 }
 0x185   : > { %v798_v60 = vpop.f32.mrf.mxu0 }
 0x186   : > { %v799_v61 = vadd.f32 %v1139_v59, %v798_v60 }
 0x188   : > { %v846_v62 = vmax.f32 %v799_v61, 0.0 }
 0x18a   : > { %898 = vmatmul.f32.vlgmr.msrb.gmra.mxu1 %v846_v62 }
 0x193   : > { %v801_v63 = vpop.f32.mrf.mxu2 }
 0x194   : > { %v802_v0 = vadd.f32 %v1139_v59, %v801_v63 }
 0x196   : > { %v847_v1 = vmax.f32 %v802_v0, 0.0 }
 0x198   : > { %901 = vmatmul.f32.vlgmr.msra.gmra.mxu3 %v847_v1 }
 0x19b   : > { %v804_v2 = vpop.f32.mrf.mxu2 }
 0x19c   : > { %v805_v3 = vadd.f32 %v1139_v59, %v804_v2 }
 0x19e   : > { %v848_v4 = vmax.f32 %v805_v3, 0.0 }
 0x1a0   : > { %904 = vmatmul.f32.gmra.mxu3 %v848_v4 }
 0x1a3   : > { %v807_v5 = vpop.f32.mrf.mxu2 }
 0x1a4   : > { %v808_v29 = vadd.f32 %v1139_v59, %v807_v5 }
 0x1a6   : > { %v849_v6 = vmax.f32 %v808_v29, 0.0 }
 0x1a8   : > { %907 = vmatmul.f32.gmra.mxu3 %v849_v6 }
 0x1ab   : > { %v810_v7 = vpop.f32.mrf.mxu2 }
 0x1ac   : > { %v811_v8 = vadd.f32 %v1139_v59, %v810_v7 }
 0x1ae   : > { %v850_v9 = vmax.f32 %v811_v8, 0.0 }
 0x1b0   : > { %910 = vmatmul.f32.gmra.mxu3 %v850_v9 }
 0x1b3   : > { %v813_v10 = vpop.f32.mrf.mxu2 }
 0x1b4   : > { %v814_v11 = vadd.f32 %v1139_v59, %v813_v10 }
 0x1b6   : > { %v851_v12 = vmax.f32 %v814_v11, 0.0 }
 0x1b8   : > { %913 = vmatmul.f32.gmra.mxu3 %v851_v12 }
 0x1bb   : > { %v816_v13 = vpop.f32.mrf.mxu2 }
 0x1bc   : > { %v817_v14 = vadd.f32 %v1139_v59, %v816_v13 }
 0x1be   : > { %v852_v15 = vmax.f32 %v817_v14, 0.0 }
 0x1c0   : > { %916 = vmatmul.f32.gmra.mxu3 %v852_v15 }
 0x1c3   : > { %v819_v16 = vpop.f32.mrf.mxu2 }
 0x1c4   : > { %v820_v17 = vadd.f32 %v1139_v59, %v819_v16 }
 0x1c6   : > { %v853_v18 = vmax.f32 %v820_v17, 0.0 }
 0x1c8   : > { %919 = vmatmul.f32.gmra.mxu3 %v853_v18 }
 0x1cb   : > { %v822_v19 = vpop.f32.mrf.mxu2 }
 0x1cc   : > { %v823_v20 = vadd.f32 %v1139_v59, %v822_v19 }
 0x1ce   : > { %v854_v21 = vmax.f32 %v823_v20, 0.0 }
 0x1d0   : > { %922 = vmatmul.f32.gmra.mxu3 %v854_v21 }
 0x1d3   : > { %v825_v22 = vpop.f32.mrf.mxu2 }
 0x1d4   : > { %v826_v23 = vadd.f32 %v1139_v59, %v825_v22 }
 0x1d6   : > { %v855_v24 = vmax.f32 %v826_v23, 0.0 }
 0x1d8   : > { %925 = vmatmul.f32.gmra.mxu3 %v855_v24 }
 0x1db   : > { %v828_v25 = vpop.f32.mrf.mxu2 }
 0x1dc   : > { %v829_v26 = vadd.f32 %v1139_v59, %v828_v25 }
 0x1de   : > { %v856_v27 = vmax.f32 %v829_v26, 0.0 }
 0x1e0   : > { %928 = vmatmul.f32.gmra.mxu3 %v856_v27 }
 0x1e3   : > { %v831_v28 = vpop.f32.mrf.mxu2 }
 0x1e4   : > { %v832_v30 = vadd.f32 %v1139_v59, %v831_v28 }
 0x1e6   : > { %v857_v31 = vmax.f32 %v832_v30, 0.0 }
 0x1e8   : > { %931 = vmatmul.f32.gmra.mxu3 %v857_v31 }
 0x1eb   : > { %v834_v32 = vpop.f32.mrf.mxu2 }
 0x1ec   : > { %v835_v33 = vadd.f32 %v1139_v59, %v834_v32 }
 0x1ee   : > { %v858_v34 = vmax.f32 %v835_v33, 0.0 }
 0x1f0   : > { %934 = vmatmul.f32.gmra.mxu3 %v858_v34 }
 0x1f3   : > { %v837_v35 = vpop.f32.mrf.mxu2 }
 0x1f4   : > { %v838_v36 = vadd.f32 %v1139_v59, %v837_v35 }
 0x1f6   : > { %v859_v37 = vmax.f32 %v838_v36, 0.0 }
 0x1f8   : > { %937 = vmatmul.f32.gmra.mxu3 %v859_v37 }
 0x1fb   : > { %v840_v38 = vpop.f32.mrf.mxu2 }
 0x1fc   : > { %v841_v39 = vadd.f32 %v1139_v59, %v840_v38 }
 0x1fe   : > { %v860_v40 = vmax.f32 %v841_v39, 0.0 }
 0x200   : > { %940 = vmatmul.f32.gmra.mxu3 %v860_v40 }
 0x203   : > { %v843_v41 = vpop.f32.mrf.mxu2 }
 0x204   : > { %v844_v42 = vadd.f32 %v1139_v59, %v843_v41 }
 0x206   : > { %v861_v44 = vmax.f32 %v844_v42, 0.0 }
 0x207   : > { %v899_v45 = vpop.f32.mrf.mxu1 }
 0x208   : > { %v900_v46 = vadd.f32 %v1140_v43, %v899_v45  ;;  %943 = vmatmul.f32.gmra.mxu3 %v861_v44 }
 0x20a   : > { %947 = vst.msk [vmem:[%s1484_s26] sm:$0xff] %vm611_vm1, %v900_v46 }
 0x21b   : > { %v902_v47 = vpop.f32.mrf.mxu3 }
 0x21c   : > { %v903_v48 = vadd.f32 %v1140_v43, %v902_v47 }
 0x21e   : > { %948 = vst.msk [vmem:[%s1484_s26 + $0x8] sm:$0xff] %vm611_vm1, %v903_v48 }
 0x223   : > { %v905_v49 = vpop.f32.mrf.mxu3 }
 0x224   : > { %v906_v50 = vadd.f32 %v1140_v43, %v905_v49 }
 0x226   : > { %949 = vst.msk [vmem:[%s1484_s26 + $0x10] sm:$0xff] %vm611_vm1, %v906_v50 }
 0x22b   : > { %v908_v51 = vpop.f32.mrf.mxu3 }
 0x22c   : > { %v909_v52 = vadd.f32 %v1140_v43, %v908_v51 }
 0x22e   : > { %950 = vst.msk [vmem:[%s1484_s26 + $0x18] sm:$0xff] %vm611_vm1, %v909_v52 }
 0x233   : > { %v911_v53 = vpop.f32.mrf.mxu3 }
 0x234   : > { %v912_v54 = vadd.f32 %v1140_v43, %v911_v53 }
 0x236   : > { %951 = vst.msk [vmem:[%s1484_s26 + $0x20] sm:$0xff] %vm611_vm1, %v912_v54 }
 0x23b   : > { %v914_v55 = vpop.f32.mrf.mxu3 }
 0x23c   : > { %v915_v56 = vadd.f32 %v1140_v43, %v914_v55 }
 0x23e   : > { %952 = vst.msk [vmem:[%s1484_s26 + $0x28] sm:$0xff] %vm611_vm1, %v915_v56 }
 0x243   : > { %v917_v57 = vpop.f32.mrf.mxu3 }
 0x244   : > { %v918_v58 = vadd.f32 %v1140_v43, %v917_v57 }
 0x246   : > { %953 = vst.msk [vmem:[%s1484_s26 + $0x30] sm:$0xff] %vm611_vm1, %v918_v58 }
 0x24b   : > { %v920_v59 = vpop.f32.mrf.mxu3 }
 0x24c   : > { %v921_v60 = vadd.f32 %v1140_v43, %v920_v59 }
 0x24e   : > { %954 = vst.msk [vmem:[%s1484_s26 + $0x38] sm:$0xff] %vm611_vm1, %v921_v60 }
 0x253   : > { %v923_v61 = vpop.f32.mrf.mxu3 }
 0x254   : > { %v924_v62 = vadd.f32 %v1140_v43, %v923_v61 }
 0x256   : > { %955 = vst.msk [vmem:[%s1484_s26 + $0x40] sm:$0xff] %vm611_vm1, %v924_v62 }
 0x25b   : > { %v926_v63 = vpop.f32.mrf.mxu3 }
 0x25c   : > { %v927_v0 = vadd.f32 %v1140_v43, %v926_v63 }
 0x25e   : > { %956 = vst.msk [vmem:[%s1484_s26 + $0x48] sm:$0xff] %vm611_vm1, %v927_v0 }
 0x263   : > { %v929_v1 = vpop.f32.mrf.mxu3 }
 0x264   : > { %v930_v2 = vadd.f32 %v1140_v43, %v929_v1 }
 0x266   : > { %957 = vst.msk [vmem:[%s1484_s26 + $0x50] sm:$0xff] %vm611_vm1, %v930_v2 }
 0x26b   : > { %v932_v3 = vpop.f32.mrf.mxu3 }
 0x26c   : > { %v933_v4 = vadd.f32 %v1140_v43, %v932_v3 }
 0x26e   : > { %958 = vst.msk [vmem:[%s1484_s26 + $0x58] sm:$0xff] %vm611_vm1, %v933_v4 }
 0x273   : > { %v935_v5 = vpop.f32.mrf.mxu3 }
 0x274   : > { %v936_v29 = vadd.f32 %v1140_v43, %v935_v5 }
 0x276   : > { %959 = vst.msk [vmem:[%s1484_s26 + $0x60] sm:$0xff] %vm611_vm1, %v936_v29 }
 0x27b   : > { %v938_v6 = vpop.f32.mrf.mxu3 }
 0x27c   : > { %v939_v7 = vadd.f32 %v1140_v43, %v938_v6 }
 0x27e   : > { %960 = vst.msk [vmem:[%s1484_s26 + $0x68] sm:$0xff] %vm611_vm1, %v939_v7 }
 0x283   : > { %v941_v8 = vpop.f32.mrf.mxu3 }
 0x284   : > { %v942_v9 = vadd.f32 %v1140_v43, %v941_v8 }
 0x286   : > { %961 = vst.msk [vmem:[%s1484_s26 + $0x70] sm:$0xff] %vm611_vm1, %v942_v9 }
 0x28b   : > { %v944_v10 = vpop.f32.mrf.mxu3 }
 0x28c   : > { %v945_v11 = vadd.f32 %v1140_v43, %v944_v10 }
 0x28e   : > { %962 = vst.msk [vmem:[%s1484_s26 + $0x78] sm:$0xff] %vm611_vm1, %v945_v11 }
 0x28f PF: > { %s19_s30 = sadd.s32 1, %s1147_s30  }
 0x290   : > { %p16_p4 = scmp.ge.s32.totalorder %s19_s30, 4  }
 0x292   :  { %18 = sbr.rel (!%p16_p4) target bundleno = 1 (0x1), region = 89 }

</bundles_post_ra>
